<compile_context>
chip_gen: v7x
topology: tpu7x:2x2x1
jax: 0.10.0
libtpu: 0.0.40
codegen_flags: <defaults>
</compile_context>

<pallas_src>
import functools

import jax
import jax.numpy as jnp
from jax.experimental import pallas as pl
from jax.experimental.pallas import tpu as pltpu


def _round_up(x, m):
    return ((x + m - 1) // m) * m


def actor_critic_kernel(state_ref, w_sh_ref, b_sh_ref, w_ac1_ref, b_ac1_ref,
                        w_ac2_ref, b_ac2_ref, out_ref, *, action_dim):
    # bf16 MXU inputs, f32 accumulation; biases added in f32.
    x = state_ref[...].astype(jnp.bfloat16)

    # shared: Linear(S, H) + ReLU
    h = jnp.dot(x, w_sh_ref[...], preferred_element_type=jnp.float32)
    h = jnp.maximum(h + b_sh_ref[...], 0.0)

    # fused actor/critic layer 1: Linear(H, 2H) + ReLU   (y = [actor_h | critic_h])
    y = jnp.dot(h.astype(jnp.bfloat16), w_ac1_ref[...],
                preferred_element_type=jnp.float32)
    y = jnp.maximum(y + b_ac1_ref[...], 0.0)

    # fused actor/critic layer 2: block-diagonal [2H, P] matmul
    z = jnp.dot(y.astype(jnp.bfloat16), w_ac2_ref[...],
                preferred_element_type=jnp.float32) + b_ac2_ref[...]

    # softmax over logit lanes only; padded lanes masked to -inf -> exp == 0
    lane = jax.lax.broadcasted_iota(jnp.int32, z.shape, 1)
    is_logit = lane < action_dim
    masked = jnp.where(is_logit, z, -jnp.inf)
    m = jnp.max(masked, axis=-1, keepdims=True)
    e = jnp.exp(masked - m)
    probs = e / jnp.sum(e, axis=-1, keepdims=True)      # exact normalization

    # lane-dense output slab: [probs | value | zeros]
    slab = jnp.where(is_logit, probs,
                     jnp.where(lane == action_dim, z, 0.0))
    out_ref[...] = slab.astype(out_ref.dtype)


def _choose_block_rows(batch, block_b):
    """Pick a batch tile: big enough to amortize per-step overhead, >= 2 grid
    steps once the batch is large (v7x megacore), and dividing `batch` when
    possible so no hot-path pad copy is needed."""
    b8 = _round_up(batch, 8)
    bb = min(_round_up(max(block_b, 8), 8), b8)
    # A single-step grid leaves v7x's second TensorCore idle; split once the
    # batch is big enough to be worth it (zero cost on v5e/v6e).
    if bb >= b8 and b8 >= 1024:
        bb = _round_up(pl.cdiv(b8, 2), 8)
    # Prefer a tile that divides the batch exactly (skips jnp.pad), as long as
    # the tile stays reasonably large.
    if batch % 8 == 0 and batch % bb != 0:
        for cand in range(bb - 8, 0, -8):
            if batch % cand == 0:
                if cand >= max(256, bb // 4):
                    bb = cand
                break
    return bb


def actor_critic_forward_packed(state, fused, action_dim, *, block_b=2048,
                                out_dtype=jnp.float32):
    """Runs the fused kernel; returns the packed [B_pad, P] slab:
         lanes [0, A)  -> softmax action probabilities
         lane  A       -> state value
         lanes (A, P)  -> zeros
       Rows >= state.shape[0] (if any) are pad rows."""
    B, S = state.shape
    H = fused["w_sh"].shape[1]
    twoH = fused["w_ac1"].shape[1]
    P = fused["w_ac2"].shape[1]
    assert action_dim + 1 <= P, "output slab too narrow for action_dim + value"

    bb = _choose_block_rows(B, block_b)
    B_pad = _round_up(B, bb)
    if B_pad != B:
        state = jnp.pad(state, ((0, B_pad - B), (0, 0)))

    out_bytes = jnp.dtype(out_dtype).itemsize
    weight_bytes = (S * H + H * twoH + twoH * P) * 2 + (H + twoH + P) * 4
    vmem_est = (2 * bb * S * 4 + 2 * bb * P * out_bytes + 4 * weight_bytes
                + bb * (H + twoH + 4 * P) * 4 + (4 << 20))
    vmem_limit = int(max(32 << 20, vmem_est))

    kernel = functools.partial(actor_critic_kernel, action_dim=action_dim)

    return pl.pallas_call(
        kernel,
        out_shape=jax.ShapeDtypeStruct((B_pad, P), out_dtype),
        grid=(B_pad // bb,),
        in_specs=[
            pl.BlockSpec((bb, S), lambda i: (i, 0)),     # state: tiled over batch
            pl.BlockSpec((S, H), lambda i: (0, 0)),      # weights/biases: constant
            pl.BlockSpec((1, H), lambda i: (0, 0)),      # blocks -> VMEM-resident
            pl.BlockSpec((H, twoH), lambda i: (0, 0)),
            pl.BlockSpec((1, twoH), lambda i: (0, 0)),
            pl.BlockSpec((twoH, P), lambda i: (0, 0)),
            pl.BlockSpec((1, P), lambda i: (0, 0)),
        ],
        out_specs=pl.BlockSpec((bb, P), lambda i: (i, 0)),
        compiler_params=pltpu.CompilerParams(
            dimension_semantics=("parallel",),
            vmem_limit_bytes=vmem_limit),
    )(state, fused["w_sh"], fused["b_sh"], fused["w_ac1"], fused["b_ac1"],
      fused["w_ac2"], fused["b_ac2"])


def unpack_outputs(slab, batch, action_dim):
    """Single unpack pass for consumers that want (probs, value) explicitly."""
    probs = slab[:batch, :action_dim].astype(jnp.float32)
    value = slab[:batch, action_dim:action_dim + 1].astype(jnp.float32)
    return probs, value


def actor_critic_forward(state, fused, action_dim, **kwargs):
    slab = actor_critic_forward_packed(state, fused, action_dim, **kwargs)
    return unpack_outputs(slab, state.shape[0], action_dim)


def init_params(key, state_dim, action_dim, hidden_dim):
    """PyTorch-default-style uniform init; weights stored [in, out], f32."""
    def linear(key, fan_in, fan_out):
        kw, kb = jax.random.split(key)
        bound = 1.0 / jnp.sqrt(float(fan_in))
        w = jax.random.uniform(kw, (fan_in, fan_out), jnp.float32, -bound, bound)
        b = jax.random.uniform(kb, (1, fan_out), jnp.float32, -bound, bound)
        return w, b

    k = jax.random.split(key, 5)
    w_sh, b_sh = linear(k[0], state_dim, hidden_dim)
    w_a1, b_a1 = linear(k[1], hidden_dim, hidden_dim)
    w_a2, b_a2 = linear(k[2], hidden_dim, action_dim)
    w_c1, b_c1 = linear(k[3], hidden_dim, hidden_dim)
    w_c2, b_c2 = linear(k[4], hidden_dim, 1)
    return dict(w_sh=w_sh, b_sh=b_sh, w_a1=w_a1, b_a1=b_a1, w_a2=w_a2,
                b_a2=b_a2, w_c1=w_c1, b_c1=b_c1, w_c2=w_c2, b_c2=b_c2)


def fuse_params(p, action_dim):
    """Build fused head weights once (off the hot path). Weights stored bf16
    (MXU-native on v5e/v6e/v7x); biases stay f32 and are added after the f32
    accumulation. Output lane padding derived from action_dim."""
    H = p["w_sh"].shape[1]
    A = action_dim
    out_pad = _round_up(A + 1, 128)
    w_ac1 = jnp.concatenate([p["w_a1"], p["w_c1"]], axis=1)           # [H, 2H]
    b_ac1 = jnp.concatenate([p["b_a1"], p["b_c1"]], axis=1)           # [1, 2H]
    w_ac2 = jnp.zeros((2 * H, out_pad), jnp.float32)
    w_ac2 = w_ac2.at[:H, :A].set(p["w_a2"])                           # actor block
    w_ac2 = w_ac2.at[H:, A:A + 1].set(p["w_c2"])                      # critic block
    b_ac2 = jnp.zeros((1, out_pad), jnp.float32)
    b_ac2 = b_ac2.at[:, :A].set(p["b_a2"])
    b_ac2 = b_ac2.at[:, A:A + 1].set(p["b_c2"])
    return dict(w_sh=p["w_sh"].astype(jnp.bfloat16), b_sh=p["b_sh"],
                w_ac1=w_ac1.astype(jnp.bfloat16), b_ac1=b_ac1,
                w_ac2=w_ac2.astype(jnp.bfloat16), b_ac2=b_ac2)


def reference_forward(state, p):
    h = jnp.maximum(state @ p["w_sh"] + p["b_sh"], 0.0)
    a = jnp.maximum(h @ p["w_a1"] + p["b_a1"], 0.0)
    logits = a @ p["w_a2"] + p["b_a2"]
    probs = jax.nn.softmax(logits, axis=-1)
    c = jnp.maximum(h @ p["w_c1"] + p["b_c1"], 0.0)
    value = c @ p["w_c2"] + p["b_c2"]
    return probs, value


if __name__ == "__main__":
    # TODO(synk): the PyTorch module's host-side print()/shape-guard ValueError
    # are Python-level and intentionally not replicated in the kernel.
    state_dim, action_dim, hidden_dim = 16, 8, 128   # hidden_dim = module default
    batch = 8

    key = jax.random.PRNGKey(0)
    k_params, k_state, k_big, k_odd = jax.random.split(key, 4)
    params = init_params(k_params, state_dim, action_dim, hidden_dim)
    fused = fuse_params(params, action_dim)

    # Small batch (grid = 1).
    state = jax.random.normal(k_state, (batch, state_dim), dtype=jnp.float32)
    probs, value = actor_critic_forward(state, fused, action_dim)
    probs, value = jax.block_until_ready((probs, value))
    ref_probs, ref_value = reference_forward(state, params)
    assert probs.shape == (batch, action_dim)
    assert value.shape == (batch, 1)
    # bf16 matmul inputs/weights (f32 accumulation) -> ~1e-2-level tolerance
    assert jnp.allclose(probs, ref_probs, atol=1e-2, rtol=1e-2)
    assert jnp.allclose(value, ref_value, atol=2e-2, rtol=2e-2)
    # exact softmax normalization (no approx reciprocal)
    assert jnp.allclose(jnp.sum(probs, axis=-1), 1.0, atol=1e-5)

    # Large batch: 2048-row tiles, 2-step parallel grid (uses both v7x TCs),
    # no hot-path pad; packed slab consumed directly, unpacked once.
    big_batch = 4096
    big_state = jax.random.normal(k_big, (big_batch, state_dim), dtype=jnp.float32)
    slab = actor_critic_forward_packed(big_state, fused, action_dim)
    slab = jax.block_until_ready(slab)
    assert slab.shape[1] % 128 == 0
    big_probs, big_value = unpack_outputs(slab, big_batch, action_dim)
    ref_bp, ref_bv = reference_forward(big_state, params)
    assert big_probs.shape == (big_batch, action_dim)
    assert big_value.shape == (big_batch, 1)
    assert jnp.allclose(big_probs, ref_bp, atol=1e-2, rtol=1e-2)
    assert jnp.allclose(big_value, ref_bv, atol=2e-2, rtol=2e-2)

    # Ragged batch (exercises the pad-to-tile path and output trimming).
    odd_batch = 3
    odd_state = jax.random.normal(k_odd, (odd_batch, state_dim), dtype=jnp.float32)
    odd_probs, odd_value = actor_critic_forward(odd_state, fused, action_dim)
    odd_probs, odd_value = jax.block_until_ready((odd_probs, odd_value))
    ref_op, ref_ov = reference_forward(odd_state, params)
    assert odd_probs.shape == (odd_batch, action_dim)
    assert odd_value.shape == (odd_batch, 1)
    assert jnp.allclose(odd_probs, ref_op, atol=1e-2, rtol=1e-2)
    assert jnp.allclose(odd_value, ref_ov, atol=2e-2, rtol=2e-2)

    print("KERNEL_OK")
</pallas_src>

<mosaic_0001>
module attributes {stable_mosaic.version = 11 : i64} {
  func.func @actor_critic_kernel(%arg0: i32, %arg1: memref<8x16xf32, #tpu.memory_space<vmem>>, %arg2: memref<16x128xbf16, #tpu.memory_space<vmem>>, %arg3: memref<1x128xf32, #tpu.memory_space<vmem>>, %arg4: memref<128x256xbf16, #tpu.memory_space<vmem>>, %arg5: memref<1x256xf32, #tpu.memory_space<vmem>>, %arg6: memref<256x128xbf16, #tpu.memory_space<vmem>>, %arg7: memref<1x128xf32, #tpu.memory_space<vmem>>, %arg8: memref<8x128xf32, #tpu.memory_space<vmem>>) attributes {dimension_semantics = [#tpu.dimension_semantics<parallel>], iteration_bounds = array<i64: 1>, scalar_prefetch = 0 : i64, scratch_operands = 0 : i64, tpu.core_type = #tpu.core_type<tc>, window_params = [{transform_indices = @transform_0, window_bounds = array<i64: 8, 16>}, {pipeline_mode = #tpu.pipeline_mode<synchronous>, transform_indices = @transform_1, window_bounds = array<i64: 16, 128>}, {pipeline_mode = #tpu.pipeline_mode<synchronous>, transform_indices = @transform_2, window_bounds = array<i64: 1, 128>}, {pipeline_mode = #tpu.pipeline_mode<synchronous>, transform_indices = @transform_3, window_bounds = array<i64: 128, 256>}, {pipeline_mode = #tpu.pipeline_mode<synchronous>, transform_indices = @transform_4, window_bounds = array<i64: 1, 256>}, {pipeline_mode = #tpu.pipeline_mode<synchronous>, transform_indices = @transform_5, window_bounds = array<i64: 256, 128>}, {pipeline_mode = #tpu.pipeline_mode<synchronous>, transform_indices = @transform_6, window_bounds = array<i64: 1, 128>}, {transform_indices = @transform_7, window_bounds = array<i64: 8, 128>}]} {
    %c0 = arith.constant 0 : index
    %c0_0 = arith.constant 0 : index
    %0 = vector.load %arg1[%c0, %c0_0] : memref<8x16xf32, #tpu.memory_space<vmem>>, vector<8x16xf32>
    %1 = arith.truncf %0 : vector<8x16xf32> to vector<8x16xbf16>
    %c0_1 = arith.constant 0 : index
    %c0_2 = arith.constant 0 : index
    %2 = vector.load %arg2[%c0_1, %c0_2] : memref<16x128xbf16, #tpu.memory_space<vmem>>, vector<16x128xbf16>
    %cst = arith.constant dense<0.000000e+00> : vector<8x128xf32>
    %3 = tpu.matmul %1, %2, %cst {dimension_numbers = #tpu.dot_dimension_numbers<[1], [0], [0], [1], [0, 0, 1, 1], [], []>} : vector<8x16xbf16>, vector<16x128xbf16>, vector<8x128xf32> -> vector<8x128xf32>
    %c0_3 = arith.constant 0 : index
    %c0_4 = arith.constant 0 : index
    %4 = vector.load %arg3[%c0_3, %c0_4] : memref<1x128xf32, #tpu.memory_space<vmem>>, vector<1x128xf32>
    %5 = vector.broadcast %4 : vector<1x128xf32> to vector<8x128xf32>
    %6 = arith.addf %3, %5 : vector<8x128xf32>
    %cst_5 = arith.constant 0.000000e+00 : f32
    %7 = vector.broadcast %cst_5 : f32 to vector<8x128xf32>
    %8 = arith.maximumf %6, %7 : vector<8x128xf32>
    %9 = arith.truncf %8 : vector<8x128xf32> to vector<8x128xbf16>
    %c0_6 = arith.constant 0 : index
    %c0_7 = arith.constant 0 : index
    %10 = vector.load %arg4[%c0_6, %c0_7] : memref<128x256xbf16, #tpu.memory_space<vmem>>, vector<128x256xbf16>
    %cst_8 = arith.constant dense<0.000000e+00> : vector<8x256xf32>
    %11 = tpu.matmul %9, %10, %cst_8 {dimension_numbers = #tpu.dot_dimension_numbers<[1], [0], [0], [1], [0, 0, 1, 1], [], []>} : vector<8x128xbf16>, vector<128x256xbf16>, vector<8x256xf32> -> vector<8x256xf32>
    %c0_9 = arith.constant 0 : index
    %c0_10 = arith.constant 0 : index
    %12 = vector.load %arg5[%c0_9, %c0_10] : memref<1x256xf32, #tpu.memory_space<vmem>>, vector<1x256xf32>
    %13 = vector.broadcast %12 : vector<1x256xf32> to vector<8x256xf32>
    %14 = arith.addf %11, %13 : vector<8x256xf32>
    %cst_11 = arith.constant 0.000000e+00 : f32
    %15 = vector.broadcast %cst_11 : f32 to vector<8x256xf32>
    %16 = arith.maximumf %14, %15 : vector<8x256xf32>
    %17 = arith.truncf %16 : vector<8x256xf32> to vector<8x256xbf16>
    %c0_12 = arith.constant 0 : index
    %c0_13 = arith.constant 0 : index
    %18 = vector.load %arg6[%c0_12, %c0_13] : memref<256x128xbf16, #tpu.memory_space<vmem>>, vector<256x128xbf16>
    %cst_14 = arith.constant dense<0.000000e+00> : vector<8x128xf32>
    %19 = tpu.matmul %17, %18, %cst_14 {dimension_numbers = #tpu.dot_dimension_numbers<[1], [0], [0], [1], [0, 0, 1, 1], [], []>} : vector<8x256xbf16>, vector<256x128xbf16>, vector<8x128xf32> -> vector<8x128xf32>
    %c0_15 = arith.constant 0 : index
    %c0_16 = arith.constant 0 : index
    %20 = vector.load %arg7[%c0_15, %c0_16] : memref<1x128xf32, #tpu.memory_space<vmem>>, vector<1x128xf32>
    %21 = vector.broadcast %20 : vector<1x128xf32> to vector<8x128xf32>
    %22 = arith.addf %19, %21 : vector<8x128xf32>
    %23 = tpu.iota {dimensions = array<i32: 1>} : vector<8x128xi32>
    %c8_i32 = arith.constant 8 : i32
    %24 = vector.broadcast %c8_i32 : i32 to vector<8x128xi32>
    %25 = arith.cmpi slt, %23, %24 : vector<8x128xi32>
    %cst_17 = arith.constant 0xFF800000 : f32
    %26 = vector.broadcast %cst_17 : f32 to vector<8x128xf32>
    %27 = arith.select %25, %22, %26 : vector<8x128xi1>, vector<8x128xf32>
    %cst_18 = arith.constant dense<0xFF800000> : vector<8xf32>
    %28 = vector.multi_reduction <maximumf>, %27, %cst_18 [1] : vector<8x128xf32> to vector<8xf32>
    %29 = vector.shape_cast %28 : vector<8xf32> to vector<8x1xf32>
    %30 = vector.broadcast %29 : vector<8x1xf32> to vector<8x128xf32>
    %31 = arith.subf %27, %30 : vector<8x128xf32>
    %32 = math.exp %31 : vector<8x128xf32>
    %cst_19 = arith.constant dense<0.000000e+00> : vector<8xf32>
    %33 = vector.multi_reduction <add>, %32, %cst_19 [1] : vector<8x128xf32> to vector<8xf32>
    %34 = vector.shape_cast %33 : vector<8xf32> to vector<8x1xf32>
    %35 = vector.broadcast %34 : vector<8x1xf32> to vector<8x128xf32>
    %36 = arith.divf %32, %35 : vector<8x128xf32>
    %c8_i32_20 = arith.constant 8 : i32
    %37 = vector.broadcast %c8_i32_20 : i32 to vector<8x128xi32>
    %38 = arith.cmpi eq, %23, %37 : vector<8x128xi32>
    %cst_21 = arith.constant 0.000000e+00 : f32
    %39 = vector.broadcast %cst_21 : f32 to vector<8x128xf32>
    %40 = arith.select %38, %22, %39 : vector<8x128xi1>, vector<8x128xf32>
    %41 = arith.select %25, %36, %40 : vector<8x128xi1>, vector<8x128xf32>
    %c0_22 = arith.constant 0 : index
    %c0_23 = arith.constant 0 : index
    %42 = vector.load %arg8[%c0_22, %c0_23] : memref<8x128xf32, #tpu.memory_space<vmem>>, vector<8x128xf32>
    tpu.vector_store %arg8[%c0_22, %c0_23], %41 {strides = array<i32>} : memref<8x128xf32, #tpu.memory_space<vmem>>, vector<8x128xf32>,
    return
  }
  func.func @transform_0(%arg0: i32) -> (i32, i32) {
    %c0_i32 = arith.constant 0 : i32
    %c0_i32_0 = arith.constant 0 : i32
    return %arg0, %c0_i32 : i32, i32
  }
  func.func @transform_1(%arg0: i32) -> (i32, i32) {
    %c0_i32 = arith.constant 0 : i32
    %c0_i32_0 = arith.constant 0 : i32
    %c0_i32_1 = arith.constant 0 : i32
    return %c0_i32, %c0_i32_0 : i32, i32
  }
  func.func @transform_2(%arg0: i32) -> (i32, i32) {
    %c0_i32 = arith.constant 0 : i32
    %c0_i32_0 = arith.constant 0 : i32
    %c0_i32_1 = arith.constant 0 : i32
    return %c0_i32, %c0_i32_0 : i32, i32
  }
  func.func @transform_3(%arg0: i32) -> (i32, i32) {
    %c0_i32 = arith.constant 0 : i32
    %c0_i32_0 = arith.constant 0 : i32
    %c0_i32_1 = arith.constant 0 : i32
    return %c0_i32, %c0_i32_0 : i32, i32
  }
  func.func @transform_4(%arg0: i32) -> (i32, i32) {
    %c0_i32 = arith.constant 0 : i32
    %c0_i32_0 = arith.constant 0 : i32
    %c0_i32_1 = arith.constant 0 : i32
    return %c0_i32, %c0_i32_0 : i32, i32
  }
  func.func @transform_5(%arg0: i32) -> (i32, i32) {
    %c0_i32 = arith.constant 0 : i32
    %c0_i32_0 = arith.constant 0 : i32
    %c0_i32_1 = arith.constant 0 : i32
    return %c0_i32, %c0_i32_0 : i32, i32
  }
  func.func @transform_6(%arg0: i32) -> (i32, i32) {
    %c0_i32 = arith.constant 0 : i32
    %c0_i32_0 = arith.constant 0 : i32
    %c0_i32_1 = arith.constant 0 : i32
    return %c0_i32, %c0_i32_0 : i32, i32
  }
  func.func @transform_7(%arg0: i32) -> (i32, i32) {
    %c0_i32 = arith.constant 0 : i32
    %c0_i32_0 = arith.constant 0 : i32
    return %arg0, %c0_i32 : i32, i32
  }
}

</mosaic_0001>

<bundles_post_ra>
// kernel: tpu_custom_call.1
= control target key start
LH: loop header
LB: loop body
LE: loop exit
PB: predicated region body
PF: predicated region fallthrough
CT: control target
= control target key end

     0   :  { %12 = vsyncpa [#allocation3], 0  ;;  %s876_s0 = inlined_call_operand.hbm [shape: f32[8,16], index: 0, kind: input, shape index: {}]   ;;  %s877_s1 = inlined_call_operand.hbm [shape: bf16[16,128], index: 1, kind: input, shape index: {}]   ;;  %s878_s2 = inlined_call_operand.vmem [shape: f32[1,128], index: 2, kind: input, shape index: {}]   ;;  %s879_s3 = inlined_call_operand.hbm [shape: bf16[128,256], index: 3, kind: input, shape index: {}]   ;;  %s880_s4 = inlined_call_operand.vmem [shape: f32[1,256], index: 4, kind: input, shape index: {}]   ;;  %s881_s5 = inlined_call_operand.hbm [shape: bf16[256,128], index: 5, kind: input, shape index: {}]   ;;  %s882_s6 = inlined_call_operand.vmem [shape: f32[1,128], index: 6, kind: input, shape index: {}]   ;;  %s883_s7 = inlined_call_operand.hbm [shape: f32[8,128], index: 7, kind: output, shape index: {}]  }
   0x1   :  { %13 = vsyncpa [#allocation6], 0 }
   0x2   :  { %14 = vsyncpa [#allocation9], 0 }
   0x3   :  { %15 = vsyncpa [#allocation4], 0  ;;  %s747_s24 = smov [#allocation5]   ;;  %s629_s28 = scalar_lea.hbm %s877_s1, 128 }
   0x4   :  { %s31_s25 = sshll.u32 %s747_s24, 4  ;;  %p630_p0 = scmp.ne.s32.totalorder %s877_s1, %s629_s28  ;;  %s32_s25 = int_to_ptr.vmem [resolvable:$true] %s31_s25 }
   0x5   :  { %p633_p1 = scmp.lt.u32.totalorder %s629_s28, %s877_s1 }
   0x7   :  { %p635_p2 = pnand %p633_p1, %p630_p0 }
   0x9   :  { %638 = shalt.err (!%p635_p2)
}
   0xa   :  { %s639_s10 = scalar_lea.vmem %s32_s25, 128  ;;  %p644_p4 = scmp.lt.s32.totalorder %s32_s25, %s32_s25 }
   0xb   :  { %p640_p3 = scmp.ne.s32.totalorder %s32_s25, %s639_s10  ;;  %p645_p5 = scmp.lt.s32.totalorder %s639_s10, %s639_s10 }
   0xd   :  { %p646_p6 = por %p645_p5, %p644_p4 }
   0xf   :  { %p647_p7 = pnand %p646_p6, %p640_p3 }
  0x11   :  { %650 = shalt.err (!%p647_p7)
}
  0x12   :  { %s748_s11 = smov 64   ;;  %s749_s12 = smov 4  }
  0x13   :  { %37 = dma.hbm_to_vmem [thread:$0]  %s877_s1, 128, %s32_s25, [#allocation6], %s748_s11, %s748_s11, %s749_s12  }
  0x14   :  { %s750_s15 = smov [#allocation2]   ;;  %s751_s17 = smov [#allocation7]  }
  0x15   :  { %s22_s16 = sshll.u32 %s750_s15, 4  ;;  %s45_s18 = sshll.u32 %s751_s17, 4  ;;  %s23_s16 = int_to_ptr.vmem [resolvable:$true] %s22_s16  ;;  %s46_s18 = int_to_ptr.vmem [resolvable:$true] %s45_s18 }
  0x16   :  { %s651_s21 = scalar_lea.hbm %s876_s0, 128 }
  0x17   :  { %p652_p8 = scmp.ne.s32.totalorder %s876_s0, %s651_s21  ;;  %p655_p9 = scmp.lt.u32.totalorder %s651_s21, %s876_s0 }
  0x19   :  { %p657_p10 = pnand %p655_p9, %p652_p8 }
  0x1b   :  { %660 = shalt.err (!%p657_p10)
}
  0x1c   :  { %s661_s1 = scalar_lea.vmem %s23_s16, 128  ;;  %p666_p12 = scmp.lt.s32.totalorder %s23_s16, %s23_s16 }
  0x1d   :  { %p662_p11 = scmp.ne.s32.totalorder %s23_s16, %s661_s1  ;;  %p667_p13 = scmp.lt.s32.totalorder %s661_s1, %s661_s1 }
  0x1f   :  { %p668_p0 = por %p667_p13, %p666_p12 }
  0x21   :  { %p669_p1 = pnand %p668_p0, %p662_p11 }
  0x23   :  { %672 = shalt.err (!%p669_p1)
}
  0x24   :  { %25 = dma.hbm_to_vmem [thread:$0]  %s876_s0, 128, %s23_s16, [#allocation3]  }
  0x25   :  { %s673_s30 = scalar_lea.hbm %s879_s3, 2048 }
  0x26   :  { %p674_p2 = scmp.ne.s32.totalorder %s879_s3, %s673_s30  ;;  %p677_p3 = scmp.lt.u32.totalorder %s673_s30, %s879_s3 }
  0x28   :  { %p679_p4 = pnand %p677_p3, %p674_p2 }
  0x2a   :  { %682 = shalt.err (!%p679_p4)
}
  0x2b   :  { %s683_s14 = scalar_lea.vmem %s46_s18, 2048  ;;  %p688_p6 = scmp.lt.s32.totalorder %s46_s18, %s46_s18 }
  0x2c   :  { %p684_p5 = scmp.ne.s32.totalorder %s46_s18, %s683_s14  ;;  %p689_p7 = scmp.lt.s32.totalorder %s683_s14, %s683_s14 }
  0x2e   :  { %p690_p8 = por %p689_p7, %p688_p6 }
  0x30   :  { %p691_p9 = pnand %p690_p8, %p684_p5 }
  0x32   :  { %694 = shalt.err (!%p691_p9)
}
  0x33   :  { %s752_s0 = smov 128   ;;  %s753_s15 = smov 8  }
  0x34   :  { %51 = dma.hbm_to_vmem [thread:$0]  %s879_s3, 2048, %s46_s18, [#allocation6], %s752_s0, %s752_s0, %s753_s15  }
  0x35   :  { %s754_s19 = smov [#allocation8]   ;;  %s695_s23 = scalar_lea.hbm %s881_s5, 2048 }
  0x36   :  { %s59_s20 = sshll.u32 %s754_s19, 4  ;;  %p696_p10 = scmp.ne.s32.totalorder %s881_s5, %s695_s23  ;;  %s60_s20 = int_to_ptr.vmem [resolvable:$true] %s59_s20 }
  0x37   :  { %p699_p11 = scmp.lt.u32.totalorder %s695_s23, %s881_s5 }
  0x39   :  { %p701_p12 = pnand %p699_p11, %p696_p10 }
  0x3b   :  { %704 = shalt.err (!%p701_p12)
}
  0x3c   :  { %s705_s27 = scalar_lea.vmem %s60_s20, 2048  ;;  %p710_p0 = scmp.lt.s32.totalorder %s60_s20, %s60_s20 }
  0x3d   :  { %p706_p13 = scmp.ne.s32.totalorder %s60_s20, %s705_s27  ;;  %p711_p1 = scmp.lt.s32.totalorder %s705_s27, %s705_s27 }
  0x3f   :  { %p712_p2 = por %p711_p1, %p710_p0 }
  0x41   :  { %p713_p3 = pnand %p712_p2, %p706_p13 }
  0x43   :  { %716 = shalt.err (!%p713_p3)
}
  0x44   :  { %65 = dma.hbm_to_vmem [thread:$0]  %s881_s5, 2048, %s60_s20, [#allocation9], %s748_s11, %s748_s11, %s749_s12  }
  0x45   :  { %739 = dma.done.wait [#allocation3], 128  }
  0x46   :  { %740 = vsyncadd [#allocation3], 4294967168 }
  0x47   :  { %741 = dma.done.wait [#allocation6], 2176  }
  0x48   :  { %742 = vsyncadd [#allocation6], 4294965120 }
  0x49   :  { %743 = dma.done.wait [#allocation9], 2048  }
  0x4a   :  { %744 = vsyncadd [#allocation9], 4294965248  ;;  %v755_v0 = vmov 0.0   ;;  %vm756_vm0 = vmmov 0   ;;  %v584_v1 = vld [vmem:[#allocation5] sm:$0xff]   ;;  %v81_v2 = vld [vmem:[#allocation2] sm:$0xff]  ;;  %v162_v45 = vlaneseq }
  0x4b   :  { %566 = vmatprep.subr.bf16.mxu0 %v755_v0  ;;  %568 = vmatprep.mubr.msk.bf16.mxu0 %vm756_vm0, %v755_v0  ;;  %v82_v3 = vpack.c.bf16 %v81_v2, %v81_v2  ;;  %vm98_vm1 = vcmask 130048   ;;  %v585_v4 = vld [vmem:[#allocation7 + $0x4] ss:$8 sps:$4 sm:$0xff]   ;;  %v587_v5 = vld [vmem:[#allocation7] ss:$8 sps:$4 sm:$0xff]   ;;  %v757_v20 = vmov 0  }
  0x4c   :  { %567 = vmatpush3.bf16.msra.mxu0 %v584_v1  ;;  %v588_v6 = vld [vmem:[#allocation7 + $0x14] ss:$8 sps:$4 sm:$0xff]   ;;  %252 = vmatprep.subr.bf16.mxu1 %v585_v4  ;;  %v590_v7 = vld [vmem:[#allocation7 + $0x10] ss:$8 sps:$4 sm:$0xff]   ;;  %v591_v8 = vld [vmem:[#allocation7 + $0x24] ss:$8 sps:$4 sm:$0xff]  }
  0x4d   :  { %253 = vmatpush1.bf16.msra.mxu1 %v587_v5  ;;  %v593_v9 = vld [vmem:[#allocation7 + $0x20] ss:$8 sps:$4 sm:$0xff]   ;;  %v594_v10 = vld [vmem:[#allocation7 + $0x34] ss:$8 sps:$4 sm:$0xff]   ;;  %v596_v11 = vld [vmem:[#allocation7 + $0x30] ss:$8 sps:$4 sm:$0xff]   ;;  %284 = vmatprep.mubr.bf16.mxu1 %v757_v20 }
  0x4e   :  { %254 = vmatprep.subr.bf16.mxu1 %v588_v6  ;;  %v597_v12 = vld [vmem:[#allocation7 + $0x44] ss:$8 sps:$4 sm:$0xff]   ;;  %v599_v13 = vld [vmem:[#allocation7 + $0x40] ss:$8 sps:$4 sm:$0xff]   ;;  %v600_v14 = vld [vmem:[#allocation7 + $0x54] ss:$8 sps:$4 sm:$0xff]  }
  0x4f   :  { %569 = vmatmul.mubr.msk.bf16.vlgmr.msra.gmra.mrb[0].mxu0 %vm98_vm1, %v82_v3  ;;  %v602_v15 = vld [vmem:[#allocation7 + $0x50] ss:$8 sps:$4 sm:$0xff]   ;;  %v603_v16 = vld [vmem:[#allocation7 + $0x64] ss:$8 sps:$4 sm:$0xff]   ;;  %v605_v17 = vld [vmem:[#allocation7 + $0x60] ss:$8 sps:$4 sm:$0xff]  }
  0x50   :  { %v606_v18 = vld [vmem:[#allocation7 + $0x74] ss:$8 sps:$4 sm:$0xff]   ;;  %v608_v19 = vld [vmem:[#allocation7 + $0x70] ss:$8 sps:$4 sm:$0xff]   ;;  %v609_v21 = vld [vmem:[#allocation8 + $0x40] sm:$0xff]   ;;  %v163_v46 = vshrl.u32 %v162_v45, 7 }
  0x51   :  { %255 = vmatpush1.bf16.msra.mxu1 %v590_v7  ;;  %v610_v22 = vld [vmem:[#allocation8] sm:$0xff]   ;;  %v611_v23 = vld [vmem:[#allocation8 + $0x48] sm:$0xff]   ;;  %544 = vmatprep.subr.bf16.mxu0 %v609_v21  ;;  %v613_v25 = vld [vmem:[#allocation8 + $0x50] sm:$0xff]   ;;  %v473_v62 = vand.u32 127, %v162_v45  ;;  %s758_s29 = smov [#allocation10]  }
  0x52   :  { %256 = vmatprep.subr.bf16.mxu1 %v591_v8  ;;  %545 = vmatpush3.bf16.msra.mxu0 %v610_v22  ;;  %v612_v24 = vld [vmem:[#allocation8 + $0x8] sm:$0xff]   ;;  %v614_v26 = vld [vmem:[#allocation8 + $0x10] sm:$0xff]   ;;  %v615_v27 = vld [vmem:[#allocation8 + $0x58] sm:$0xff]   ;;  %v164_v47 = vsub.s32 0, %v163_v46  ;;  %v168_v49 = vsub.s32 1, %v163_v46 }
  0x53   :  { %546 = vmatprep.subr.bf16.mxu0 %v611_v23  ;;  %v616_v28 = vld [vmem:[#allocation8 + $0x18] sm:$0xff]   ;;  %v617_v29 = vld [vmem:[#allocation8 + $0x60] sm:$0xff]   ;;  %v619_v31 = vld [vmem:[#allocation8 + $0x68] sm:$0xff]   ;;  %vm474_vm2 = vcmp.lt.s32.totalorder %v473_v62, 8  ;;  %vm485_vm3 = vcmp.eq.s32.totalorder %v473_v62, 8 }
  0x54   :  { %v618_v30 = vld [vmem:[#allocation8 + $0x20] sm:$0xff]   ;;  %v620_v32 = vld [vmem:[#allocation8 + $0x28] sm:$0xff]   ;;  %v506_v33 = vld [vmem:[%s878_s2] ss:$0 sm:$0xff] }
  0x55   :  { %257 = vmatpush1.bf16.msra.mxu1 %v593_v9  ;;  %v621_v41 = vld [vmem:[#allocation8 + $0x70] sm:$0xff]   ;;  %v623_v43 = vld [vmem:[#allocation8 + $0x78] sm:$0xff]  }
  0x56   :  { %258 = vmatprep.subr.bf16.mxu1 %v594_v10  ;;  %547 = vmatpush3.bf16.msra.mxu0 %v612_v24  ;;  %v622_v42 = vld [vmem:[#allocation8 + $0x30] sm:$0xff]   ;;  %v624_v44 = vld [vmem:[#allocation8 + $0x38] sm:$0xff]  }
  0x57   :  { %548 = vmatprep.subr.bf16.mxu0 %v613_v25  ;;  %v160_v48 = vld [vmem:[%s880_s4] sm:$0x3] }
  0x58   :  { %v165_v50 = vrot.slane %v160_v48, %v164_v47  ;;  %v169_v51 = vrot.slane %v160_v48, %v168_v49  ;;  %v525_v1 = vld [vmem:[%s882_s6] ss:$0 sm:$0xff]  ;;  %s495_s6 = sshll.u32 %s758_s29, 4  ;;  %s496_s6 = int_to_ptr.vmem [resolvable:$true] %s495_s6 }
  0x59   :  { %259 = vmatpush1.bf16.msra.mxu1 %v596_v11  ;;  %s717_s30 = scalar_lea.vmem %s496_s6, 128  ;;  %p722_p5 = scmp.lt.s32.totalorder %s496_s6, %s496_s6 }
  0x5a   :  { %260 = vmatprep.subr.bf16.mxu1 %v597_v12  ;;  %549 = vmatpush3.bf16.msra.mxu0 %v614_v26  ;;  %p718_p4 = scmp.ne.s32.totalorder %s496_s6, %s717_s30  ;;  %p723_p6 = scmp.lt.s32.totalorder %s717_s30, %s717_s30 }
  0x5b   :  { %550 = vmatprep.subr.bf16.mxu0 %v615_v27 }
  0x5c   :  { %p724_p7 = por %p723_p6, %p722_p5 }
  0x5d   :  { %261 = vmatpush1.bf16.msra.mxu1 %v599_v13 }
  0x5e   :  { %262 = vmatprep.subr.bf16.mxu1 %v600_v14  ;;  %551 = vmatpush3.bf16.msra.mxu0 %v616_v28  ;;  %p725_p8 = pnand %p724_p7, %p718_p4 }
  0x5f   :  { %552 = vmatprep.subr.bf16.mxu0 %v617_v29 }
  0x61   :  { %263 = vmatpush1.bf16.msra.mxu1 %v602_v15 }
  0x62   :  { %264 = vmatprep.subr.bf16.mxu1 %v603_v16  ;;  %553 = vmatpush3.bf16.msra.mxu0 %v618_v30 }
  0x63   :  { %554 = vmatprep.subr.bf16.mxu0 %v619_v31 }
  0x65   :  { %265 = vmatpush1.bf16.msra.mxu1 %v605_v17 }
  0x66   :  { %266 = vmatprep.subr.bf16.mxu1 %v606_v18  ;;  %555 = vmatpush3.bf16.msra.mxu0 %v620_v32 }
  0x67   :  { %556 = vmatprep.subr.bf16.mxu0 %v621_v41 }
  0x69   :  { %267 = vmatpush1.bf16.msra.mxu1 %v608_v19 }
  0x6a   :  { %557 = vmatpush3.bf16.msra.mxu0 %v622_v42 }
  0x6b   :  { %558 = vmatprep.subr.bf16.mxu0 %v623_v43 }
  0x6e   :  { %559 = vmatpush3.bf16.msra.mxu0 %v624_v44 }
 0x122   :  { %v136_v34 = vpop.f32.mrb[0].mxu0 }
 0x123   :  { %v137_v35 = vadd.f32 %v506_v33, %v136_v34  ;;  %v570_v36 = vpop.f32.mrb[1].mxu0 }
 0x124   :  { %v139_v37 = vpop.f32.mrb[2].mxu0 }
 0x125   :  { %v142_v38 = vmax.f32 %v137_v35, 0.0  ;;  %v571_v39 = vpop.f32.mrb[3].mxu0 }
 0x127   :  { %v143_v40 = vpack.c.bf16 %v142_v38, %v142_v38 }
 0x129   :  { %285 = vmatmul.mubr.bf16.vlgmr.msra.gmra.mrb[0].mxu1 %v143_v40 }
 0x1fc   :  { %v286_v52 = vpop.f32.mrb[0].mxu1 }
 0x1fd   :  { %v287_v53 = vadd.f32 %v286_v52, %v165_v50  ;;  %v288_v54 = vpop.f32.mrb[1].mxu1 }
 0x1fe   :  { %v289_v55 = vadd.f32 %v288_v54, %v169_v51  ;;  %v290_v56 = vpop.f32.mrb[2].mxu1 }
 0x1ff   :  { %v293_v57 = vmax.f32 %v287_v53, 0.0  ;;  %v291_v58 = vpop.f32.mrb[3].mxu1 }
 0x200   :  { %v294_v59 = vmax.f32 %v289_v55, 0.0 }
 0x201   :  { %v295_v61 = vpack.c.bf16 %v293_v57, %v293_v57 }
 0x202   :  { %v296_v60 = vpack.c.bf16 %v294_v59, %v294_v59 }
 0x204   :  { %464 = vmatprep.mubr.bf16.mxu0 %v296_v60 }
 0x205   :  { %465 = vmatmul.mubr.bf16.vlgmr.msra.gmra.mrb[4].mxu0 %v295_v61 }
 0x2d8   :  { %v560_v63 = vpop.f32.mrb[4].mxu0 }
 0x2d9   :  { %v561_v0 = vpop.f32.mrb[5].mxu0 }
 0x2da   :  { %v562_v2 = vadd.f32 %v561_v0, %v560_v63  ;;  %v563_v3 = vpop.f32.mrb[6].mxu0 }
 0x2db   :  { %v564_v4 = vpop.f32.mrb[7].mxu0 }
 0x2dc   :  { %v467_v5 = vadd.f32 %v562_v2, %v525_v1 }
 0x2de   :  { %v475_v6 = vsel %vm474_vm2, %v467_v5, -inf  ;;  %v486_v7 = vsel %vm485_vm3, %v467_v5, 0.0 }
 0x2df   :  { %476 = vmax.xlane.f32.xlu0 %v475_v6 }
 0x36c   :  { %v477_v8 = vpop.xlane.xlu0 %476 }
 0x36d   :  { %v478_v9 = vsub.f32 %v475_v6, %v477_v8 }
 0x36f   :  { %v479_v10 = vmul.f32 1.442695, %v478_v9 }
 0x371   :  { %625 = vpow2.f32 %v479_v10 }
 0x37b   :  { %v626_v11 = vpop.eup %625 }
 0x37c   :  { %481 = vadd.xlane.f32.xlu0 %v626_v11 }
 0x409   :  { %v482_v12 = vpop.xlane.xlu0 %481 }
 0x40a   :  { %627 = vrcp.f32 %v482_v12 }
 0x414   :  { %v628_v13 = vpop.eup %627 }
 0x415   :  { %v484_v14 = vmul.f32 %v628_v13, %v626_v11 }
 0x417   :  { %v487_v15 = vsel %vm474_vm2, %v484_v14, %v486_v7 }
 0x418   :  { %488 = vst [vmem:[#allocation10] sm:$0xff] %v487_v15 }
 0x419   :  { %728 = shalt.err (!%p725_p8)
}
 0x41a   :  { %s729_s10 = scalar_lea.hbm %s883_s7, 128 }
 0x41b   :  { %p730_p9 = scmp.ne.s32.totalorder %s883_s7, %s729_s10  ;;  %p733_p10 = scmp.lt.u32.totalorder %s729_s10, %s883_s7 }
 0x41d   :  { %p735_p11 = pnand %p733_p10, %p730_p9 }
 0x41f   :  { %738 = shalt.err (!%p735_p11)
}
 0x420   :  { %498 = dma.vmem_to_hbm [thread:$0]  %s496_s6, 128, %s883_s7, [#allocation4]  }
 0x421   :  { %745 = dma.done.wait [#allocation4], 128  }
 0x422   :  { %746 = vsyncadd [#allocation4], 4294967168 }
 0x423   :  { %502 = vsyncpa [#allocation3], 1 }
 0x424   :  { %503 = vsyncpa [#allocation6], 1 }
 0x425   :  { %504 = vsyncpa [#allocation9], 1 }
 0x426   :  { %505 = vsyncpa [#allocation4], 1 }

</bundles_post_ra>
